<compile_context>
chip_gen: v5e
topology: v5e:2x2
jax: 0.10.0
libtpu: 0.0.40
codegen_flags: <defaults>
</compile_context>

<pallas_src>
import re

import jax
import jax.numpy as jnp
from jax.experimental import pallas as pl
from jax.experimental.pallas import tpu as pltpu


def _make_gelu2_kernel(compute_dtype):
    def kernel(x_ref, o_ref):
        x = x_ref[...].astype(compute_dtype)
        # x * sigmoid(1.702*x) == 0.5*x*(1 + tanh(0.851*x)): exact identity,
        # single EUP transcendental, no inf intermediates for large |x|.
        y = 0.5 * x * (1.0 + jnp.tanh(0.851 * x))
        o_ref[...] = y.astype(o_ref.dtype)

    return kernel


def _tpu_generation() -> int:
    """Best-effort TPU generation (5, 6, 7, ...). Defaults to 6 if unknown."""
    try:
        kind = jax.devices()[0].device_kind.lower()
        m = re.search(r"(\d+)", kind)
        if m:
            return int(m.group(1))
    except Exception:
        pass
    return 6


def _round_up(v: int, m: int) -> int:
    return ((v + m - 1) // m) * m


def _plan_layout(n: int):
    """Lane-dense (rows, cols) reshape for a flat n-element tensor."""
    for c in (8192, 4096, 2048, 1024, 512, 256, 128):
        if n % c == 0:
            return n // c, c
    # n is not a multiple of 128, so no divisor-based reshape can give a
    # 128-multiple last dim.  Use a single row with a 128-aligned column tile;
    # only the final tail block takes masked stores.
    return 1, n


def gelu2(
    x: jax.Array,
    *,
    target_block_bytes: int | None = None,  # default is generation-aware
    min_grid_steps: int | None = None,      # >1 only where 2 TensorCores exist
    donate_input: bool = False,
) -> jax.Array:
    """GELU2 = x * sigmoid(1.702 * x), elementwise, any shape/dtype.

    Note: donate_input=True aliases the input HBM buffer to the output, but it
    only avoids an extra allocation/copy if the caller also donates x at the
    jit boundary (jax.jit(..., donate_argnums=...)); otherwise XLA inserts a
    copy and the alias is moot.
    """
    orig_shape = x.shape
    n = x.size
    if n == 0:  # degenerate-shape guard (avoids rows = n // cols = 0)
        return x

    gen = _tpu_generation()
    if target_block_bytes is None:
        # ~4 MiB on v7x (per-step overhead relatively larger at 3.2 TB/s HBM),
        # ~2 MiB elsewhere (8 MiB total double-buffered: fits v5e's 16 MiB
        # scoped-VMEM default).
        target_block_bytes = (4 << 20) if gen >= 7 else (2 << 20)
    if min_grid_steps is None:
        # Only v7x has 2 TensorCores per chip; on single-TC v5e/v6e extra grid
        # steps are a pure serial loop, so don't force a split.
        min_grid_steps = 4 if gen >= 7 else 1

    # bf16 math where the chip has a bf16 VPU/EUP (v6e/v7x); f32 on v5e.
    if x.dtype == jnp.bfloat16 and gen >= 6:
        compute_dtype = jnp.bfloat16
    else:
        compute_dtype = jnp.float32

    dtype_bytes = x.dtype.itemsize
    sublane = max(8, 32 // dtype_bytes)  # f32 -> 8, bf16 -> 16, int8/fp8 -> 32

    rows, cols = _plan_layout(n)
    x2 = x.reshape(rows, cols)

    # Column tile: whole row if it fits the budget, else a 128-aligned chunk
    # (only reachable on the single-row ragged fallback with a huge n).
    if cols * dtype_bytes <= target_block_bytes:
        col_tile = cols
    else:
        block_rows = sublane if rows > 1 else 1
        col_tile = max(
            128, (target_block_bytes // (block_rows * dtype_bytes)) // 128 * 128
        )
    grid_cols = pl.cdiv(cols, col_tile)

    # Row tile: ~target_block_bytes per block, sublane-aligned, but small
    # enough to leave >= min_grid_steps row blocks when rows permit (v7x only).
    max_rows = max(sublane, target_block_bytes // max(1, col_tile * dtype_bytes))
    desired = min(max_rows, pl.cdiv(rows, min_grid_steps))
    row_tile = _round_up(max(1, desired), sublane)
    if row_tile >= rows:
        row_tile = rows  # full-extent block is always a legal block shape
    grid_rows = pl.cdiv(rows, row_tile)

    in_spec_kwargs = {}
    if gen >= 7:
        # Third input buffer (+1 block of VMEM, still ~20 MiB total) helps hide
        # DMA issue latency/jitter behind the ~1 us/step DMA on v7x.
        in_spec_kwargs["pipeline_mode"] = pl.Buffered(3)

    out = pl.pallas_call(
        _make_gelu2_kernel(compute_dtype),
        out_shape=jax.ShapeDtypeStruct((rows, cols), x.dtype),
        grid_spec=pltpu.PrefetchScalarGridSpec(
            num_scalar_prefetch=0,
            grid=(grid_rows, grid_cols),
            in_specs=[
                pl.BlockSpec((row_tile, col_tile), lambda i, j: (i, j),
                             **in_spec_kwargs)
            ],
            out_specs=pl.BlockSpec((row_tile, col_tile), lambda i, j: (i, j)),
        ),
        compiler_params=pltpu.CompilerParams(
            dimension_semantics=("parallel", "parallel"),
        ),
        input_output_aliases=({0: 0} if donate_input else {}),
    )(x2)

    return out.reshape(orig_shape)


def gelu2_ref(x):
    return x * jax.nn.sigmoid(1.702 * x)


if __name__ == "__main__":
    key = jax.random.PRNGKey(0)
    # batch=2, seq=8, hidden=32 (small test shape consistent with the module)
    x = jax.random.normal(key, (2, 8, 32), dtype=jnp.float32)

    y = gelu2(x)
    jax.block_until_ready(y)

    y_ref = gelu2_ref(x)
    assert y.shape == x.shape and y.dtype == x.dtype
    assert jnp.allclose(y, y_ref, atol=1e-3, rtol=5e-3), float(
        jnp.max(jnp.abs(y - y_ref))
    )

    print("KERNEL_OK")
</pallas_src>

<mosaic_0001>
module attributes {stable_mosaic.version = 11 : i64} {
  func.func @kernel(%arg0: i32, %arg1: i32, %arg2: memref<1x512xf32, #tpu.memory_space<vmem>>, %arg3: memref<1x512xf32, #tpu.memory_space<vmem>>) attributes {dimension_semantics = [#tpu.dimension_semantics<parallel>, #tpu.dimension_semantics<parallel>], iteration_bounds = array<i64: 1, 1>, scalar_prefetch = 0 : i64, scratch_operands = 0 : i64, tpu.core_type = #tpu.core_type<tc>, window_params = [{transform_indices = @transform_0, window_bounds = array<i64: 1, 512>}, {transform_indices = @transform_1, window_bounds = array<i64: 1, 512>}]} {
    %c0 = arith.constant 0 : index
    %c0_0 = arith.constant 0 : index
    %0 = vector.load %arg2[%c0, %c0_0] : memref<1x512xf32, #tpu.memory_space<vmem>>, vector<1x512xf32>
    %cst = arith.constant 5.000000e-01 : f32
    %1 = vector.broadcast %cst : f32 to vector<1x512xf32>
    %2 = arith.mulf %1, %0 : vector<1x512xf32>
    %cst_1 = arith.constant 8.510000e-01 : f32
    %3 = vector.broadcast %cst_1 : f32 to vector<1x512xf32>
    %4 = arith.mulf %3, %0 : vector<1x512xf32>
    %5 = math.tanh %4 : vector<1x512xf32>
    %cst_2 = arith.constant 1.000000e+00 : f32
    %6 = vector.broadcast %cst_2 : f32 to vector<1x512xf32>
    %7 = arith.addf %6, %5 : vector<1x512xf32>
    %8 = arith.mulf %2, %7 : vector<1x512xf32>
    %c0_3 = arith.constant 0 : index
    %c0_4 = arith.constant 0 : index
    %9 = vector.load %arg3[%c0_3, %c0_4] : memref<1x512xf32, #tpu.memory_space<vmem>>, vector<1x512xf32>
    tpu.vector_store %arg3[%c0_3, %c0_4], %8 {strides = array<i32>} : memref<1x512xf32, #tpu.memory_space<vmem>>, vector<1x512xf32>,
    return
  }
  func.func @transform_0(%arg0: i32, %arg1: i32) -> (i32, i32) {
    %c0_i32 = arith.constant 0 : i32
    return %arg0, %arg1 : i32, i32
  }
  func.func @transform_1(%arg0: i32, %arg1: i32) -> (i32, i32) {
    %c0_i32 = arith.constant 0 : i32
    return %arg0, %arg1 : i32, i32
  }
}

</mosaic_0001>

<bundles_post_ra>
// kernel: tpu_custom_call.1
= control target key start
LH: loop header
LB: loop body
LE: loop exit
PB: predicated region body
PF: predicated region fallthrough
CT: control target
= control target key end

     0   :  { %6 = vsyncpa [#allocation3], 0  ;;  %s125_s0 = inlined_call_operand.hbm [shape: f32[1,512], index: 0, kind: input, shape index: {}]   ;;  %s126_s1 = inlined_call_operand.hbm [shape: f32[1,512], index: 1, kind: output, shape index: {}]  }
   0x1   :  { %7 = vsyncpa [#allocation4], 0  ;;  %s13_s8 = sshll.u32 %s125_s0, 4  ;;  %s107_s9 = smov [#allocation2]   ;;  %s14_s8 = int_to_ptr.hbm [resolvable:$true] %s13_s8 }
   0x2   :  { %s15_s10 = sshll.u32 %s107_s9, 4  ;;  %s16_s10 = int_to_ptr.vmem [resolvable:$true] %s15_s10 }
   0x3   :  { %18 = dma.hbm_to_vmem [thread:$0]  %s14_s8, 64, %s16_s10, [#allocation3]  }
   0x4   :  { %103 = dma.done.wait [#allocation3], 64  }
   0x5   :  { %104 = vsyncadd [#allocation3], 4294967232  ;;  %v23_v0 = vld [vmem:[#allocation2] sm:$0xf]  ;;  %v29_v2 = vlaneseq  ;;  %s108_s11 = smov [#allocation5]   ;;  %s41_s15 = sshll.u32 %s126_s1, 4  ;;  %s42_s15 = int_to_ptr.hbm [resolvable:$true] %s41_s15 }
   0x6   :  { %v25_v1 = vmul.f32 0.851, %v23_v0  ;;  %v24_v3 = vmul.f32 0.5, %v23_v0  ;;  %s39_s12 = sshll.u32 %s108_s11, 4  ;;  %s40_s12 = int_to_ptr.vmem [resolvable:$true] %s39_s12 }
   0x7   :  { %vm31_vm0 = vcmp.lt.s32.totalorder %v29_v2, 512 }
   0x8   :  { %53 = vtanh.f32 %v25_v1 }
   0xe   :  { %v54_v4 = vpop.eup %53 }
   0xf   :  { %v27_v5 = vadd.f32 1.0, %v54_v4 }
  0x11   :  { %v28_v6 = vmul.f32 %v27_v5, %v24_v3 }
  0x13   :  { %33 = vst.msk [vmem:[#allocation5] sm:$0xf] %vm31_vm0, %v28_v6 }
  0x14   :  { %44 = dma.vmem_to_hbm [thread:$0]  %s40_s12, 64, %s42_s15, [#allocation4]  }
  0x15   :  { %105 = dma.done.wait [#allocation4], 64  }
  0x16   :  { %106 = vsyncadd [#allocation4], 4294967232 }
  0x17   :  { %49 = vsyncpa [#allocation3], 1 }
  0x18   :  { %50 = vsyncpa [#allocation4], 1 }

</bundles_post_ra>
